<compile_context>
chip_gen: v7x
topology: tpu7x:2x2x1
jax: 0.10.0
libtpu: 0.0.40
codegen_flags: <defaults>
</compile_context>

<pallas_src>
import math

import jax
import jax.numpy as jnp
from jax import lax
from jax.experimental import pallas as pl
from jax.experimental.pallas import tpu as pltpu


RAYS_PER_ROW = 128            # one [x,y,z] triplet per ray; 128 rays per row
LANE_W = 3 * RAYS_PER_ROW     # 384 lanes per lane-dense row (3 * 128)


def _cdiv(a, b):
    return -(-a // b)


# ----------------------------------------------------------------------------
# Kernel 1: contraction  —  (x - aabb_min) * inv_aabb_size   (lane-dense)
# ----------------------------------------------------------------------------
def _contraction_kernel(x_ref, amin_ref, ainv_ref, o_ref):
    # x_ref: (RB, 384) interleaved [x,y,z] * 128 rays per row.
    # amin_ref/ainv_ref: (1, 384), broadcast over the sublane (row) axis.
    o_ref[...] = (x_ref[...] - amin_ref[...]) * ainv_ref[...]


def contraction(x, amin_row, ainv_row, *, rows_per_block=1024):
    """x: (N, 3) float32; amin_row / ainv_row: (1, 384) pre-tiled constants."""
    N, C = x.shape
    assert C == 3
    assert x.dtype == jnp.float32, "fp32 expected (reciprocal-mul path)"
    assert rows_per_block % 8 == 0

    rows = _cdiv(N, RAYS_PER_ROW)
    n_pad = rows * RAYS_PER_ROW - N
    if n_pad:
        # TODO(synk): bulk/tail split would avoid this full-copy pad + slice.
        x = jnp.pad(x, ((0, n_pad), (0, 0)))
    x2 = x.reshape(rows, LANE_W)          # free row-major view, no transpose

    rb = rows if rows <= rows_per_block else rows_per_block
    grid = pl.cdiv(rows, rb)              # partial last block: OOB writes dropped

    out = pl.pallas_call(
        _contraction_kernel,
        out_shape=jax.ShapeDtypeStruct((rows, LANE_W), x.dtype),
        grid_spec=pltpu.PrefetchScalarGridSpec(
            num_scalar_prefetch=0,
            grid=(grid,),
            in_specs=[
                pl.BlockSpec((rb, LANE_W), lambda i: (i, 0)),
                pl.BlockSpec((1, LANE_W), lambda i: (0, 0)),
                pl.BlockSpec((1, LANE_W), lambda i: (0, 0)),
            ],
            out_specs=pl.BlockSpec((rb, LANE_W), lambda i: (i, 0)),
        ),
        compiler_params=pltpu.CompilerParams(
            dimension_semantics=("parallel",)),
    )(x2, amin_row, ainv_row)

    out = out.reshape(rows * RAYS_PER_ROW, 3)
    return out[:N] if n_pad else out


# ----------------------------------------------------------------------------
# Kernel 2: compute_loss  —  weighted smooth-L1 reduction (lane-dense)
#   per step : pure VPU elementwise + leading-axis partial reduce into a
#              vreg-sized (1, 384) accumulator (no accumulator streaming)
#   final    : single cross-lane reduce -> (1,1) num / den
# ----------------------------------------------------------------------------
def _make_loss_kernel(rows_valid, rb):
    needs_mask = (rows_valid % rb) != 0   # only the partial last block reads OOB

    def kernel(rgb_ref, gt_ref, w3_ref, num_ref, den_ref, acc_num, acc_den):
        i = pl.program_id(0)

        @pl.when(i == 0)
        def _():
            acc_num[...] = jnp.zeros_like(acc_num)
            acc_den[...] = jnp.zeros_like(acc_den)

        diff = rgb_ref[...] - gt_ref[...]                       # (RB, 384)
        ad = jnp.abs(diff)
        # F.smooth_l1_loss, beta = 1.0 (PyTorch default)
        sl1 = jnp.where(ad < 1.0, 0.5 * diff * diff, ad - 0.5)  # (RB, 384)
        w = w3_ref[...]                                         # (RB, 384)

        num_c = sl1 * w
        den_c = w
        if needs_mask:
            # Mask rows past the array edge (garbage in the partial block).
            row_ids = i * rb + lax.broadcasted_iota(jnp.int32, (rb, LANE_W), 0)
            valid = row_ids < rows_valid
            num_c = jnp.where(valid, num_c, 0.0)
            den_c = jnp.where(valid, den_c, 0.0)

        # Leading-axis partial reduce: vreg adds + one cross-sublane fold;
        # accumulator stays vreg-sized so steady-state stores are ~3 vst/step.
        acc_num[...] += jnp.sum(num_c, axis=0, keepdims=True)   # (1, 384)
        acc_den[...] += jnp.sum(den_c, axis=0, keepdims=True)

        @pl.when(i == pl.num_programs(0) - 1)
        def _():
            num_ref[...] = jnp.sum(acc_num[...], keepdims=True)            # (1,1)
            # w3 repeats each ray weight over 3 channels -> divide by 3.
            den_ref[...] = jnp.sum(acc_den[...], keepdims=True) * (1.0 / 3.0)

    return kernel


def compute_loss(rgb, rgb_gt, alpha, loss_multi, *, rows_per_block=1024):
    # rgb, rgb_gt: (N, 3); alpha, loss_multi: (N, 1)  — all float32.
    N = rgb.shape[0]
    assert rgb.dtype == jnp.float32
    assert rows_per_block % 8 == 0

    # Effective per-ray weight (mask folded in) — one fused XLA pass; the
    # alpha stream never reaches the kernel.
    w = loss_multi * (alpha > 0.0).astype(rgb.dtype)            # (N, 1)

    rows = _cdiv(N, RAYS_PER_ROW)
    n_pad = rows * RAYS_PER_ROW - N
    if n_pad:
        # Padded rays carry zero weight (w padded with 0) and zero rgb/gt.
        rgb = jnp.pad(rgb, ((0, n_pad), (0, 0)))
        rgb_gt = jnp.pad(rgb_gt, ((0, n_pad), (0, 0)))
        w = jnp.pad(w, ((0, n_pad), (0, 0)))
    n_rays = rows * RAYS_PER_ROW

    rgb2 = rgb.reshape(rows, LANE_W)                            # free views
    gt2 = rgb_gt.reshape(rows, LANE_W)
    w3 = jnp.broadcast_to(w, (n_rays, 3)).reshape(rows, LANE_W)  # lane-dense weight

    rb = rows if rows <= rows_per_block else rows_per_block
    grid = pl.cdiv(rows, rb)

    num, den = pl.pallas_call(
        _make_loss_kernel(rows, rb),
        out_shape=(jax.ShapeDtypeStruct((1, 1), jnp.float32),
                   jax.ShapeDtypeStruct((1, 1), jnp.float32)),
        grid_spec=pltpu.PrefetchScalarGridSpec(
            num_scalar_prefetch=0,
            grid=(grid,),
            in_specs=[
                pl.BlockSpec((rb, LANE_W), lambda i: (i, 0)),
                pl.BlockSpec((rb, LANE_W), lambda i: (i, 0)),
                pl.BlockSpec((rb, LANE_W), lambda i: (i, 0)),
            ],
            out_specs=[pl.BlockSpec((1, 1), lambda i: (0, 0)),
                       pl.BlockSpec((1, 1), lambda i: (0, 0))],
            scratch_shapes=[pltpu.VMEM((1, LANE_W), jnp.float32),
                            pltpu.VMEM((1, LANE_W), jnp.float32)],
        ),
        compiler_params=pltpu.CompilerParams(
            dimension_semantics=("arbitrary",)),
    )(rgb2, gt2, w3)

    num = num[0, 0]
    den = den[0, 0]
    # All-masked guard (reference would divide by zero -> NaN).
    return jnp.where(den > 0.0, num / den, jnp.float32(0.0))


# ----------------------------------------------------------------------------
# RFModel wrapper (glue in plain JAX; kernels for the hot paths)
# ----------------------------------------------------------------------------
class RFModelPallas:
    def __init__(self, aabb, samples_per_ray=2048):
        self.aabb = jnp.asarray(aabb, dtype=jnp.float32)          # (6,)
        self.samples_per_ray = samples_per_ray
        aabb_min, aabb_max = self.aabb[:3], self.aabb[3:]
        self.aabb_size = aabb_max - aabb_min
        assert float(self.aabb_size[0]) == float(self.aabb_size[1]) \
            == float(self.aabb_size[2]), "cube aabb only"
        self.render_step_size = float(
            jnp.max(aabb_max - aabb_min) * math.sqrt(3) / samples_per_ray)
        # Lane-dense fp32 constants; multiply by 1/size instead of dividing
        # (differs from the PyTorch divide by <= 1 ULP in fp32).
        inv_size = 1.0 / self.aabb_size
        self._amin_row = jnp.tile(aabb_min.reshape(1, 3), (1, RAYS_PER_ROW))
        self._ainv_row = jnp.tile(inv_size.reshape(1, 3), (1, RAYS_PER_ROW))

    def contraction(self, x, *, rows_per_block=1024):
        return contraction(x, self._amin_row, self._ainv_row,
                           rows_per_block=rows_per_block)

    def compute_loss(self, rgb, rgb_gt, alpha, loss_multi, *,
                     rows_per_block=1024):
        return {"loss": compute_loss(rgb, rgb_gt, alpha, loss_multi,
                                     rows_per_block=rows_per_block)}


# ----------------------------------------------------------------------------
if __name__ == "__main__":
    key = jax.random.PRNGKey(0)
    k1, k2, k3, k4, k5, k6 = jax.random.split(key, 6)

    aabb = [-1.0, -1.0, -1.0, 1.0, 1.0, 1.0]
    model = RFModelPallas(aabb, samples_per_ray=64)

    def ref_contraction(x):
        return (x - model.aabb[:3]) / (model.aabb[3:] - model.aabb[:3])

    def ref_loss(rgb, gt, alpha, lm):
        diff = rgb - gt
        ad = jnp.abs(diff)
        sl1 = jnp.where(ad < 1.0, 0.5 * diff * diff, ad - 0.5)
        mask = (alpha[:, 0] > 0.0).astype(jnp.float32)[:, None]
        w = lm * mask
        return jnp.sum(sl1 * w) / jnp.sum(w)

    # --- contraction: pad path (N % 128 != 0) and multi-block partial path ---
    for n, rpb in ((777, 1024), (1400, 8)):
        x = jax.random.uniform(k1, (n, 3), jnp.float32, minval=-1.0, maxval=1.0)
        out = jax.block_until_ready(model.contraction(x, rows_per_block=rpb))
        assert out.shape == (n, 3)
        assert jnp.allclose(out, ref_contraction(x), atol=1e-6, rtol=1e-6)

    # --- loss: single full block (no pad) and multi-block partial + mask ---
    for n, rpb in ((512, 1024), (1400, 8)):
        rgb = jax.random.uniform(k2, (n, 3), jnp.float32)
        gt = jax.random.uniform(k3, (n, 3), jnp.float32)
        alpha = jnp.where(jax.random.uniform(k4, (n, 1)) > 0.3,
                          jax.random.uniform(k5, (n, 1)), 0.0)   # some dead rays
        lm = jax.random.uniform(k6, (n, 1), jnp.float32, minval=0.5, maxval=1.5)
        loss = jax.block_until_ready(
            model.compute_loss(rgb, gt, alpha, lm, rows_per_block=rpb)["loss"])
        assert jnp.allclose(loss, ref_loss(rgb, gt, alpha, lm),
                            atol=1e-5, rtol=1e-5)

    # --- all-masked batch: den == 0 guard (reference would NaN) ---
    n = 512
    rgb = jax.random.uniform(k2, (n, 3), jnp.float32)
    gt = jax.random.uniform(k3, (n, 3), jnp.float32)
    lm = jax.random.uniform(k6, (n, 1), jnp.float32, minval=0.5, maxval=1.5)
    loss0 = jax.block_until_ready(
        model.compute_loss(rgb, gt, jnp.zeros((n, 1), jnp.float32), lm)["loss"])
    assert bool(jnp.isfinite(loss0)) and float(loss0) == 0.0

    print("KERNEL_OK")
</pallas_src>

<mosaic_0001>
module attributes {stable_mosaic.version = 11 : i64} {
  func.func @_contraction_kernel(%arg0: i32, %arg1: memref<7x384xf32, #tpu.memory_space<vmem>>, %arg2: memref<1x384xf32, #tpu.memory_space<vmem>>, %arg3: memref<1x384xf32, #tpu.memory_space<vmem>>, %arg4: memref<7x384xf32, #tpu.memory_space<vmem>>) attributes {dimension_semantics = [#tpu.dimension_semantics<parallel>], iteration_bounds = array<i64: 1>, scalar_prefetch = 0 : i64, scratch_operands = 0 : i64, tpu.core_type = #tpu.core_type<tc>, window_params = [{transform_indices = @transform_0, window_bounds = array<i64: 7, 384>}, {pipeline_mode = #tpu.pipeline_mode<synchronous>, transform_indices = @transform_1, window_bounds = array<i64: 1, 384>}, {pipeline_mode = #tpu.pipeline_mode<synchronous>, transform_indices = @transform_2, window_bounds = array<i64: 1, 384>}, {transform_indices = @transform_3, window_bounds = array<i64: 7, 384>}]} {
    %c0 = arith.constant 0 : index
    %c0_0 = arith.constant 0 : index
    %0 = vector.load %arg1[%c0, %c0_0] : memref<7x384xf32, #tpu.memory_space<vmem>>, vector<7x384xf32>
    %c0_1 = arith.constant 0 : index
    %c0_2 = arith.constant 0 : index
    %1 = vector.load %arg2[%c0_1, %c0_2] : memref<1x384xf32, #tpu.memory_space<vmem>>, vector<1x384xf32>
    %2 = vector.broadcast %1 : vector<1x384xf32> to vector<7x384xf32>
    %3 = arith.subf %0, %2 : vector<7x384xf32>
    %c0_3 = arith.constant 0 : index
    %c0_4 = arith.constant 0 : index
    %4 = vector.load %arg3[%c0_3, %c0_4] : memref<1x384xf32, #tpu.memory_space<vmem>>, vector<1x384xf32>
    %5 = vector.broadcast %4 : vector<1x384xf32> to vector<7x384xf32>
    %6 = arith.mulf %3, %5 : vector<7x384xf32>
    %c0_5 = arith.constant 0 : index
    %c0_6 = arith.constant 0 : index
    %7 = vector.load %arg4[%c0_5, %c0_6] : memref<7x384xf32, #tpu.memory_space<vmem>>, vector<7x384xf32>
    tpu.vector_store %arg4[%c0_5, %c0_6], %6 {strides = array<i32>} : memref<7x384xf32, #tpu.memory_space<vmem>>, vector<7x384xf32>,
    return
  }
  func.func @transform_0(%arg0: i32) -> (i32, i32) {
    %c0_i32 = arith.constant 0 : i32
    %c0_i32_0 = arith.constant 0 : i32
    return %arg0, %c0_i32 : i32, i32
  }
  func.func @transform_1(%arg0: i32) -> (i32, i32) {
    %c0_i32 = arith.constant 0 : i32
    %c0_i32_0 = arith.constant 0 : i32
    %c0_i32_1 = arith.constant 0 : i32
    return %c0_i32, %c0_i32_0 : i32, i32
  }
  func.func @transform_2(%arg0: i32) -> (i32, i32) {
    %c0_i32 = arith.constant 0 : i32
    %c0_i32_0 = arith.constant 0 : i32
    %c0_i32_1 = arith.constant 0 : i32
    return %c0_i32, %c0_i32_0 : i32, i32
  }
  func.func @transform_3(%arg0: i32) -> (i32, i32) {
    %c0_i32 = arith.constant 0 : i32
    %c0_i32_0 = arith.constant 0 : i32
    return %arg0, %c0_i32 : i32, i32
  }
}

</mosaic_0001>

<bundles_post_ra>
// kernel: tpu_custom_call.1
= control target key start
LH: loop header
LB: loop body
LE: loop exit
PB: predicated region body
PF: predicated region fallthrough
CT: control target
= control target key end

     0   :  { %8 = vsyncpa [#allocation3], 0  ;;  %s190_s0 = inlined_call_operand.hbm [shape: f32[7,384], index: 0, kind: input, shape index: {}]   ;;  %s191_s1 = inlined_call_operand.vmem [shape: f32[1,384], index: 1, kind: input, shape index: {}]   ;;  %s192_s2 = inlined_call_operand.vmem [shape: f32[1,384], index: 2, kind: input, shape index: {}]   ;;  %s193_s3 = inlined_call_operand.hbm [shape: f32[7,384], index: 3, kind: output, shape index: {}]  }
   0x1   :  { %9 = vsyncpa [#allocation4], 0  ;;  %s138_s12 = smov [#allocation2]   ;;  %s90_s16 = scalar_lea.hbm %s190_s0, 384 }
   0x2   :  { %s16_s13 = sshll.u32 %s138_s12, 4  ;;  %p91_p0 = scmp.ne.s32.totalorder %s190_s0, %s90_s16  ;;  %s17_s13 = int_to_ptr.vmem [resolvable:$true] %s16_s13 }
   0x3   :  { %p94_p1 = scmp.lt.u32.totalorder %s90_s16, %s190_s0 }
   0x5   :  { %p96_p2 = pnand %p94_p1, %p91_p0 }
   0x7   :  { %99 = shalt.err (!%p96_p2)
}
   0x8   :  { %s100_s21 = scalar_lea.vmem %s17_s13, 384  ;;  %p105_p4 = scmp.lt.s32.totalorder %s17_s13, %s17_s13 }
   0x9   :  { %p101_p3 = scmp.ne.s32.totalorder %s17_s13, %s100_s21  ;;  %p106_p5 = scmp.lt.s32.totalorder %s100_s21, %s100_s21 }
   0xb   :  { %p107_p6 = por %p106_p5, %p105_p4 }
   0xd   :  { %p108_p7 = pnand %p107_p6, %p101_p3 }
   0xf   :  { %111 = shalt.err (!%p108_p7)
}
  0x10   :  { %19 = dma.hbm_to_vmem [thread:$0]  %s190_s0, 384, %s17_s13, [#allocation3]  }
  0x11   :  { %134 = dma.done.wait [#allocation3], 384  }
  0x12   :  { %135 = vsyncadd [#allocation3], 4294966912  ;;  %v32_v0 = vlaneseq  ;;  %v27_v5 = vld [vmem:[#allocation2] sm:$0x7f]  ;;  %v28_v10 = vld [vmem:[#allocation2 + $0x8] sm:$0x7f] }
  0x13   :  { %v30_v6 = vld [vmem:[%s191_s1] sm:$0x7]  ;;  %v29_v13 = vld [vmem:[#allocation2 + $0x10] sm:$0x7f]  ;;  %s139_s0 = smov [#allocation5]  }
  0x14   :  { %v33_v1 = vshrl.u32 %v32_v0, 7  ;;  %v50_v7 = vld [vmem:[%s192_s2] sm:$0x7]  ;;  %s79_s28 = sshll.u32 %s139_s0, 4  ;;  %s80_s28 = int_to_ptr.vmem [resolvable:$true] %s79_s28 }
  0x15   :  { %s112_s1 = scalar_lea.vmem %s80_s28, 384  ;;  %p117_p9 = scmp.lt.s32.totalorder %s80_s28, %s80_s28 }
  0x16   :  { %v34_v2 = vsub.s32 0, %v33_v1  ;;  %v38_v3 = vsub.s32 1, %v33_v1  ;;  %v42_v4 = vsub.s32 2, %v33_v1  ;;  %p113_p8 = scmp.ne.s32.totalorder %s80_s28, %s112_s1  ;;  %p118_p10 = scmp.lt.s32.totalorder %s112_s1, %s112_s1 }
  0x18   :  { %v35_v8 = vrot.slane %v30_v6, %v34_v2  ;;  %v55_v9 = vrot.slane %v50_v7, %v34_v2  ;;  %v39_v11 = vrot.slane %v30_v6, %v38_v3  ;;  %v59_v12 = vrot.slane %v50_v7, %v38_v3  ;;  %p119_p11 = por %p118_p10, %p117_p9 }
  0x19   :  { %v43_v14 = vrot.slane %v30_v6, %v42_v4  ;;  %v63_v15 = vrot.slane %v50_v7, %v42_v4 }
  0x1a   :  { %v47_v16 = vsub.f32 %v27_v5, %v35_v8  ;;  %v48_v17 = vsub.f32 %v28_v10, %v39_v11  ;;  %p120_p12 = pnand %p119_p11, %p113_p8 }
  0x1b   :  { %v49_v18 = vsub.f32 %v29_v13, %v43_v14 }
  0x1c   :  { %v67_v19 = vmul.f32 %v55_v9, %v47_v16  ;;  %v68_v20 = vmul.f32 %v59_v12, %v48_v17 }
  0x1d   :  { %v69_v21 = vmul.f32 %v63_v15, %v49_v18 }
  0x1e   :  { %70 = vst [vmem:[#allocation5] sm:$0x7f] %v67_v19  ;;  %71 = vst [vmem:[#allocation5 + $0x8] sm:$0x7f] %v68_v20 }
  0x1f   :  { %72 = vst [vmem:[#allocation5 + $0x10] sm:$0x7f] %v69_v21 }
  0x20   :  { %123 = shalt.err (!%p120_p12)
}
  0x21   :  { %s124_s30 = scalar_lea.hbm %s193_s3, 384 }
  0x22   :  { %p125_p13 = scmp.ne.s32.totalorder %s193_s3, %s124_s30  ;;  %p128_p0 = scmp.lt.u32.totalorder %s124_s30, %s193_s3 }
  0x24   :  { %p130_p1 = pnand %p128_p0, %p125_p13 }
  0x26   :  { %133 = shalt.err (!%p130_p1)
}
  0x27   :  { %82 = dma.vmem_to_hbm [thread:$0]  %s80_s28, 384, %s193_s3, [#allocation4]  }
  0x28   :  { %136 = dma.done.wait [#allocation4], 384  }
  0x29   :  { %137 = vsyncadd [#allocation4], 4294966912 }
  0x2a   :  { %86 = vsyncpa [#allocation3], 1 }
  0x2b   :  { %87 = vsyncpa [#allocation4], 1 }

</bundles_post_ra>
